<compile_context>
chip_gen: v6e
topology: v6e:2x2x1
jax: 0.10.0
libtpu: 0.0.40
codegen_flags: <defaults>
</compile_context>

<pallas_src>
import functools
import math

import jax
import jax.numpy as jnp
from jax.experimental import pallas as pl
from jax.experimental.pallas import tpu as pltpu


# ----------------------------- configuration --------------------------------
D_MODEL = 32          # transformer_args['d_model']
MULTIRES = 4          # transformer_args['multi_res_in_delta_network']
EXPAND = 32           # transformer_args['expand_to_dim']
EMBED_DIM = 3 + MULTIRES * 2 * 3          # include_input + sin/cos per freq
D_IN = D_MODEL + EMBED_DIM                # input dim of first Linear

BATCH = 2
SEQ = 8
MAX_TILE = 256        # packed rows per grid step (= MAX_TILE * PACK original rows)


def _cdiv(a, b):
    return -(-a // b)


def _round_up(a, m):
    return _cdiv(a, m) * m


# ------------------------------- kernel --------------------------------------
def local_mlp_delta_kernel(pos_ref, x_ref, w1pe_ref, w1x_ref, b1_ref,
                           w2_ref, b2_ref, o_ref, *, freqs):
    """One row-tile of fused  PE -> concat -> Linear -> LeakyReLU -> Linear.

    Operands are 'packed': PACK consecutive original rows sit side-by-side on
    the lane axis, and the weights are block-diagonal so packed rows never mix.
    """
    pos = pos_ref[...]                       # (T, 3*PACK)
    x = x_ref[...]                           # (T, d_model*PACK)

    # NeRF positional encoding, batched over all packed sub-rows and freq
    # bands: one concat + ONE sin + ONE cos (instead of 2*multires tiny calls).
    scaled = jnp.concatenate([pos * f for f in freqs], axis=-1)   # (T, 3*PACK*F)
    pe = jnp.concatenate([pos, jnp.sin(scaled), jnp.cos(scaled)], axis=-1)

    # Linear #1: torch's cat([pe, x]) @ W1 folded into two aligned MXU matmuls
    # against pre-split / pre-permuted block-diagonal weights.
    h = jnp.dot(pe, w1pe_ref[...], preferred_element_type=jnp.float32)
    h = h + jnp.dot(x, w1x_ref[...], preferred_element_type=jnp.float32)
    h = h + b1_ref[...]

    # LeakyReLU (PyTorch default negative_slope = 0.01)
    h = jnp.where(h > 0, h, 0.01 * h)

    # TODO(synk): Dropout(0.1) is identity (eval mode); training-mode inverted
    # dropout (pltpu.prng_random_bits mask) not implemented.

    # Linear #2 (block-diagonal W2, 128-lane output -> full-width unmasked store)
    out = jnp.dot(h, w2_ref[...], preferred_element_type=jnp.float32)
    o_ref[...] = (out + b2_ref[...]).astype(o_ref.dtype)


# ------------------------- packed weight preparation --------------------------
def _build_packed_weights(w1, b1, w2, b2, *, multires, pack):
    """Split W1 into (pe, x) parts and expand all weights into block-diagonal
    matrices matching the packed (PACK rows per 128-lane row) layout.

    W1 is stored (in, out) with torch's cat([pe, x]) row order:
      rows [0:3]                 -> raw positions (include_input)
      rows [3+6j : 3+6j+3]       -> sin(2**j * pos)
      rows [3+6j+3 : 3+6j+6]     -> cos(2**j * pos)
      rows [3+6*multires : end]  -> x features
    """
    expand = w1.shape[1]
    d_embed = 3 + 6 * multires
    w1_pe = w1[:d_embed]                                       # (27, E)
    w1_x = w1[d_embed:]                                        # (d_model, E)

    eye = jnp.eye(pack, dtype=w1.dtype)
    w_pos = w1_pe[0:3]                                         # (3, E)
    w_sc = w1_pe[3:].reshape(multires, 2, 3, expand)
    w_sin, w_cos = w_sc[:, 0], w_sc[:, 1]                      # (F, 3, E)

    # Kernel-side packed pe lane layout (i = packed sub-row, c = xyz, j = freq):
    #   pos -> lane 3*i + c
    #   sin -> lane 3*pack*(1 + j)            + 3*i + c
    #   cos -> lane 3*pack*(1 + multires + j) + 3*i + c
    pos_bd = jnp.einsum('ik,ce->icke', eye, w_pos).reshape(
        3 * pack, pack * expand)
    sin_bd = jnp.einsum('ik,jce->jicke', eye, w_sin).reshape(
        3 * pack * multires, pack * expand)
    cos_bd = jnp.einsum('ik,jce->jicke', eye, w_cos).reshape(
        3 * pack * multires, pack * expand)
    w1_pe_bd = jnp.concatenate([pos_bd, sin_bd, cos_bd], axis=0)

    w1_x_bd = jnp.einsum('ik,ae->iake', eye, w1_x).reshape(
        pack * w1_x.shape[0], pack * expand)
    w2_bd = jnp.einsum('ik,ae->iake', eye, w2).reshape(
        pack * expand, pack * expand)

    b1_p = jnp.tile(b1.reshape(1, expand), (1, pack))
    b2_p = jnp.tile(b2.reshape(1, expand), (1, pack))
    return w1_pe_bd, w1_x_bd, b1_p, w2_bd, b2_p


# ------------------------------- wrapper --------------------------------------
def local_mlp_delta(x, positions, params, *, multires=MULTIRES, max_tile=MAX_TILE):
    """x: (..., d_model), positions: (..., 3) -> (..., expand)."""
    w1, b1, w2, b2 = params
    d_model = x.shape[-1]
    expand = w2.shape[1]
    lead = x.shape[:-1]
    n = math.prod(lead) if lead else 1

    pack = max(1, 128 // expand)              # rows packed per 128-lane row

    xf = x.reshape(n, d_model).astype(jnp.float32)
    pf = positions.reshape(n, 3).astype(jnp.float32)

    rows = _cdiv(n, pack)                     # packed rows required
    # Big tiles amortize the ~0.35us/step pipeline overhead; cap so large
    # problems still get >= 2 grid steps for the v7x dual TensorCores.
    tile = min(max_tile, max(8, _round_up(_cdiv(rows, 2), 8)))
    rows_pad = _round_up(rows, tile)
    n_pad = rows_pad * pack

    if n_pad != n:
        xf = jnp.pad(xf, ((0, n_pad - n), (0, 0)))
        pf = jnp.pad(pf, ((0, n_pad - n), (0, 0)))

    # Lane-dense packed views (contiguous reshapes, no data movement).
    xp = xf.reshape(rows_pad, pack * d_model)       # (R, 128)
    pp = pf.reshape(rows_pad, pack * 3)             # (R, 12)

    w1_pe, w1_x, b1_p, w2_p, b2_p = _build_packed_weights(
        w1, b1, w2, b2, multires=multires, pack=pack)

    freqs = tuple(float(2.0 ** i) for i in range(multires))   # log-sampled bands
    kernel = functools.partial(local_mlp_delta_kernel, freqs=freqs)

    grid = (rows_pad // tile,)
    out = pl.pallas_call(
        kernel,
        out_shape=jax.ShapeDtypeStruct((rows_pad, pack * expand), jnp.float32),
        grid=grid,
        in_specs=[
            pl.BlockSpec((tile, pack * 3), lambda i: (i, 0)),         # positions
            pl.BlockSpec((tile, pack * d_model), lambda i: (i, 0)),   # x
            pl.BlockSpec(w1_pe.shape, lambda i: (0, 0)),              # W1 (pe part)
            pl.BlockSpec(w1_x.shape, lambda i: (0, 0)),               # W1 (x part)
            pl.BlockSpec(b1_p.shape, lambda i: (0, 0)),               # b1
            pl.BlockSpec(w2_p.shape, lambda i: (0, 0)),               # W2
            pl.BlockSpec(b2_p.shape, lambda i: (0, 0)),               # b2
        ],
        out_specs=pl.BlockSpec((tile, pack * expand), lambda i: (i, 0)),
        compiler_params=pltpu.CompilerParams(
            dimension_semantics=("parallel",)),
    )(pp, xp, w1_pe, w1_x, b1_p, w2_p, b2_p)

    out = out.reshape(rows_pad * pack, expand)[:n]
    return out.reshape(*lead, expand)


# --------------------------- deterministic params -----------------------------
def init_params(key):
    """Deterministic torch.nn.Linear-style init; weights stored as (in, out)."""
    k1, k2, k3, k4 = jax.random.split(key, 4)
    bound1 = 1.0 / math.sqrt(D_IN)
    bound2 = 1.0 / math.sqrt(EXPAND)
    w1 = jax.random.uniform(k1, (D_IN, EXPAND), jnp.float32, -bound1, bound1)
    b1 = jax.random.uniform(k2, (1, EXPAND), jnp.float32, -bound1, bound1)
    w2 = jax.random.uniform(k3, (EXPAND, EXPAND), jnp.float32, -bound2, bound2)
    b2 = jax.random.uniform(k4, (1, EXPAND), jnp.float32, -bound2, bound2)
    return (w1, b1, w2, b2)


# ------------------------------ pure-JAX reference ----------------------------
def ref_forward(x, positions, params, *, multires=MULTIRES):
    w1, b1, w2, b2 = params
    feats = [positions]
    for i in range(multires):
        f = 2.0 ** i
        feats.append(jnp.sin(positions * f))
        feats.append(jnp.cos(positions * f))
    pe = jnp.concatenate(feats, axis=-1)
    h = jnp.concatenate([pe, x], axis=-1) @ w1 + b1
    h = jnp.where(h > 0, h, 0.01 * h)
    return h @ w2 + b2


# ----------------------------------- main --------------------------------------
if __name__ == "__main__":
    key = jax.random.PRNGKey(0)
    kx, kp, kparam = jax.random.split(key, 3)

    x = jax.random.normal(kx, (BATCH, SEQ, D_MODEL), jnp.float32)
    positions = jax.random.normal(kp, (BATCH, SEQ, 3), jnp.float32)
    params = init_params(kparam)

    out = jax.block_until_ready(local_mlp_delta(x, positions, params))

    expected = ref_forward(x, positions, params)
    assert out.shape == (BATCH, SEQ, EXPAND), out.shape
    max_err = float(jnp.max(jnp.abs(out - expected)))
    assert jnp.allclose(out, expected, rtol=1e-4, atol=1e-4), max_err

    print("KERNEL_OK")
</pallas_src>

<mosaic_0001>
module attributes {stable_mosaic.version = 11 : i64} {
  func.func @local_mlp_delta_kernel(%arg0: i32, %arg1: memref<8x12xf32, #tpu.memory_space<vmem>>, %arg2: memref<8x128xf32, #tpu.memory_space<vmem>>, %arg3: memref<108x128xf32, #tpu.memory_space<vmem>>, %arg4: memref<128x128xf32, #tpu.memory_space<vmem>>, %arg5: memref<1x128xf32, #tpu.memory_space<vmem>>, %arg6: memref<128x128xf32, #tpu.memory_space<vmem>>, %arg7: memref<1x128xf32, #tpu.memory_space<vmem>>, %arg8: memref<8x128xf32, #tpu.memory_space<vmem>>) attributes {dimension_semantics = [#tpu.dimension_semantics<parallel>], iteration_bounds = array<i64: 1>, scalar_prefetch = 0 : i64, scratch_operands = 0 : i64, tpu.core_type = #tpu.core_type<tc>, window_params = [{transform_indices = @transform_0, window_bounds = array<i64: 8, 12>}, {transform_indices = @transform_1, window_bounds = array<i64: 8, 128>}, {pipeline_mode = #tpu.pipeline_mode<synchronous>, transform_indices = @transform_2, window_bounds = array<i64: 108, 128>}, {pipeline_mode = #tpu.pipeline_mode<synchronous>, transform_indices = @transform_3, window_bounds = array<i64: 128, 128>}, {pipeline_mode = #tpu.pipeline_mode<synchronous>, transform_indices = @transform_4, window_bounds = array<i64: 1, 128>}, {pipeline_mode = #tpu.pipeline_mode<synchronous>, transform_indices = @transform_5, window_bounds = array<i64: 128, 128>}, {pipeline_mode = #tpu.pipeline_mode<synchronous>, transform_indices = @transform_6, window_bounds = array<i64: 1, 128>}, {transform_indices = @transform_7, window_bounds = array<i64: 8, 128>}]} {
    %c0 = arith.constant 0 : index
    %c0_0 = arith.constant 0 : index
    %0 = vector.load %arg1[%c0, %c0_0] : memref<8x12xf32, #tpu.memory_space<vmem>>, vector<8x12xf32>
    %c0_1 = arith.constant 0 : index
    %c0_2 = arith.constant 0 : index
    %1 = vector.load %arg2[%c0_1, %c0_2] : memref<8x128xf32, #tpu.memory_space<vmem>>, vector<8x128xf32>
    %cst = arith.constant 1.000000e+00 : f32
    %2 = vector.broadcast %cst : f32 to vector<8x12xf32>
    %3 = arith.mulf %0, %2 : vector<8x12xf32>
    %cst_3 = arith.constant 2.000000e+00 : f32
    %4 = vector.broadcast %cst_3 : f32 to vector<8x12xf32>
    %5 = arith.mulf %0, %4 : vector<8x12xf32>
    %cst_4 = arith.constant 4.000000e+00 : f32
    %6 = vector.broadcast %cst_4 : f32 to vector<8x12xf32>
    %7 = arith.mulf %0, %6 : vector<8x12xf32>
    %cst_5 = arith.constant 8.000000e+00 : f32
    %8 = vector.broadcast %cst_5 : f32 to vector<8x12xf32>
    %9 = arith.mulf %0, %8 : vector<8x12xf32>
    %10 = tpu.concatenate %3, %5, %7, %9 in 1 : vector<8x12xf32>, vector<8x12xf32>, vector<8x12xf32>, vector<8x12xf32> -> vector<8x48xf32>
    %11 = math.sin %10 : vector<8x48xf32>
    %12 = math.cos %10 : vector<8x48xf32>
    %13 = tpu.concatenate %0, %11, %12 in 1 : vector<8x12xf32>, vector<8x48xf32>, vector<8x48xf32> -> vector<8x108xf32>
    %c0_6 = arith.constant 0 : index
    %c0_7 = arith.constant 0 : index
    %14 = vector.load %arg3[%c0_6, %c0_7] : memref<108x128xf32, #tpu.memory_space<vmem>>, vector<108x128xf32>
    %cst_8 = arith.constant dense<0.000000e+00> : vector<8x128xf32>
    %15 = tpu.matmul %13, %14, %cst_8 {dimension_numbers = #tpu.dot_dimension_numbers<[1], [0], [0], [1], [0, 0, 1, 1], [], []>} : vector<8x108xf32>, vector<108x128xf32>, vector<8x128xf32> -> vector<8x128xf32>
    %c0_9 = arith.constant 0 : index
    %c0_10 = arith.constant 0 : index
    %16 = vector.load %arg4[%c0_9, %c0_10] : memref<128x128xf32, #tpu.memory_space<vmem>>, vector<128x128xf32>
    %cst_11 = arith.constant dense<0.000000e+00> : vector<8x128xf32>
    %17 = tpu.matmul %1, %16, %cst_11 {dimension_numbers = #tpu.dot_dimension_numbers<[1], [0], [0], [1], [0, 0, 1, 1], [], []>} : vector<8x128xf32>, vector<128x128xf32>, vector<8x128xf32> -> vector<8x128xf32>
    %18 = arith.addf %15, %17 : vector<8x128xf32>
    %c0_12 = arith.constant 0 : index
    %c0_13 = arith.constant 0 : index
    %19 = vector.load %arg5[%c0_12, %c0_13] : memref<1x128xf32, #tpu.memory_space<vmem>>, vector<1x128xf32>
    %20 = vector.broadcast %19 : vector<1x128xf32> to vector<8x128xf32>
    %21 = arith.addf %18, %20 : vector<8x128xf32>
    %cst_14 = arith.constant 0.000000e+00 : f32
    %22 = vector.broadcast %cst_14 : f32 to vector<8x128xf32>
    %23 = arith.cmpf ogt, %21, %22 : vector<8x128xf32>
    %cst_15 = arith.constant 0.00999999977 : f32
    %24 = vector.broadcast %cst_15 : f32 to vector<8x128xf32>
    %25 = arith.mulf %24, %21 : vector<8x128xf32>
    %26 = arith.select %23, %21, %25 : vector<8x128xi1>, vector<8x128xf32>
    %c0_16 = arith.constant 0 : index
    %c0_17 = arith.constant 0 : index
    %27 = vector.load %arg6[%c0_16, %c0_17] : memref<128x128xf32, #tpu.memory_space<vmem>>, vector<128x128xf32>
    %cst_18 = arith.constant dense<0.000000e+00> : vector<8x128xf32>
    %28 = tpu.matmul %26, %27, %cst_18 {dimension_numbers = #tpu.dot_dimension_numbers<[1], [0], [0], [1], [0, 0, 1, 1], [], []>} : vector<8x128xf32>, vector<128x128xf32>, vector<8x128xf32> -> vector<8x128xf32>
    %c0_19 = arith.constant 0 : index
    %c0_20 = arith.constant 0 : index
    %29 = vector.load %arg7[%c0_19, %c0_20] : memref<1x128xf32, #tpu.memory_space<vmem>>, vector<1x128xf32>
    %30 = vector.broadcast %29 : vector<1x128xf32> to vector<8x128xf32>
    %31 = arith.addf %28, %30 : vector<8x128xf32>
    %c0_21 = arith.constant 0 : index
    %c0_22 = arith.constant 0 : index
    %32 = vector.load %arg8[%c0_21, %c0_22] : memref<8x128xf32, #tpu.memory_space<vmem>>, vector<8x128xf32>
    tpu.vector_store %arg8[%c0_21, %c0_22], %31 {strides = array<i32>} : memref<8x128xf32, #tpu.memory_space<vmem>>, vector<8x128xf32>,
    return
  }
  func.func @transform_0(%arg0: i32) -> (i32, i32) {
    %c0_i32 = arith.constant 0 : i32
    %c0_i32_0 = arith.constant 0 : i32
    return %arg0, %c0_i32 : i32, i32
  }
  func.func @transform_1(%arg0: i32) -> (i32, i32) {
    %c0_i32 = arith.constant 0 : i32
    %c0_i32_0 = arith.constant 0 : i32
    return %arg0, %c0_i32 : i32, i32
  }
  func.func @transform_2(%arg0: i32) -> (i32, i32) {
    %c0_i32 = arith.constant 0 : i32
    %c0_i32_0 = arith.constant 0 : i32
    %c0_i32_1 = arith.constant 0 : i32
    return %c0_i32, %c0_i32_0 : i32, i32
  }
  func.func @transform_3(%arg0: i32) -> (i32, i32) {
    %c0_i32 = arith.constant 0 : i32
    %c0_i32_0 = arith.constant 0 : i32
    %c0_i32_1 = arith.constant 0 : i32
    return %c0_i32, %c0_i32_0 : i32, i32
  }
  func.func @transform_4(%arg0: i32) -> (i32, i32) {
    %c0_i32 = arith.constant 0 : i32
    %c0_i32_0 = arith.constant 0 : i32
    %c0_i32_1 = arith.constant 0 : i32
    return %c0_i32, %c0_i32_0 : i32, i32
  }
  func.func @transform_5(%arg0: i32) -> (i32, i32) {
    %c0_i32 = arith.constant 0 : i32
    %c0_i32_0 = arith.constant 0 : i32
    %c0_i32_1 = arith.constant 0 : i32
    return %c0_i32, %c0_i32_0 : i32, i32
  }
  func.func @transform_6(%arg0: i32) -> (i32, i32) {
    %c0_i32 = arith.constant 0 : i32
    %c0_i32_0 = arith.constant 0 : i32
    %c0_i32_1 = arith.constant 0 : i32
    return %c0_i32, %c0_i32_0 : i32, i32
  }
  func.func @transform_7(%arg0: i32) -> (i32, i32) {
    %c0_i32 = arith.constant 0 : i32
    %c0_i32_0 = arith.constant 0 : i32
    return %arg0, %c0_i32 : i32, i32
  }
}

</mosaic_0001>

<bundles_post_ra>
// kernel: tpu_custom_call.1
= control target key start
LH: loop header
LB: loop body
LE: loop exit
PB: predicated region body
PF: predicated region fallthrough
CT: control target
= control target key end

     0   :  { %12 = vsyncpa [#allocation3], 0  ;;  %s1127_s0 = inlined_call_operand.hbm [shape: f32[8,12], index: 0, kind: input, shape index: {}]   ;;  %s1128_s1 = inlined_call_operand.hbm [shape: f32[8,128], index: 1, kind: input, shape index: {}]   ;;  %s1129_s2 = inlined_call_operand.hbm [shape: f32[108,128], index: 2, kind: input, shape index: {}]   ;;  %s1130_s3 = inlined_call_operand.hbm [shape: f32[128,128], index: 3, kind: input, shape index: {}]   ;;  %s1131_s4 = inlined_call_operand.vmem [shape: f32[1,128], index: 4, kind: input, shape index: {}]   ;;  %s1132_s5 = inlined_call_operand.hbm [shape: f32[128,128], index: 5, kind: input, shape index: {}]   ;;  %s1133_s6 = inlined_call_operand.vmem [shape: f32[1,128], index: 6, kind: input, shape index: {}]   ;;  %s1134_s7 = inlined_call_operand.hbm [shape: f32[8,128], index: 7, kind: output, shape index: {}]  }
   0x1   :  { %13 = vsyncpa [#allocation6], 0 }
   0x2   :  { %14 = vsyncpa [#allocation9], 0 }
   0x3   :  { %15 = vsyncpa [#allocation4], 0  ;;  %s950_s24 = smov [#allocation5]  }
   0x4   :  { %s32_s25 = sshll.u32 %s950_s24, 4  ;;  %s33_s25 = int_to_ptr.vmem [resolvable:$true] %s32_s25 }
   0x5   :  { %s830_s26 = scalar_lea.vmem %s33_s25, 128  ;;  %p835_p1 = scmp.lt.s32.totalorder %s33_s25, %s33_s25 }
   0x6   :  { %p831_p0 = scmp.ne.s32.totalorder %s33_s25, %s830_s26  ;;  %p836_p2 = scmp.lt.s32.totalorder %s830_s26, %s830_s26 }
   0x8   :  { %p837_p3 = por %p836_p2, %p835_p1 }
   0xa   :  { %p838_p4 = pnand %p837_p3, %p831_p0 }
   0xc   :  { %841 = shalt.err (!%p838_p4)
}
   0xd   :  { %35 = dma.hbm_to_vmem [thread:$0]  %s1128_s1, 128, %s33_s25, [#allocation6]  }
   0xe   :  { %s951_s29 = smov [#allocation8]   ;;  %s952_s8 = smov [#allocation2]  }
   0xf   :  { %s53_s30 = sshll.u32 %s951_s29, 4  ;;  %s22_s9 = sshll.u32 %s952_s8, 4  ;;  %s54_s30 = int_to_ptr.vmem [resolvable:$true] %s53_s30  ;;  %s23_s9 = int_to_ptr.vmem [resolvable:$true] %s22_s9 }
  0x10   :  { %s850_s10 = scalar_lea.vmem %s54_s30, 2048  ;;  %p855_p6 = scmp.lt.s32.totalorder %s54_s30, %s54_s30 }
  0x11   :  { %p851_p5 = scmp.ne.s32.totalorder %s54_s30, %s850_s10  ;;  %p856_p7 = scmp.lt.s32.totalorder %s850_s10, %s850_s10 }
  0x13   :  { %p857_p8 = por %p856_p7, %p855_p6 }
  0x15   :  { %p858_p9 = pnand %p857_p8, %p851_p5 }
  0x17   :  { %861 = shalt.err (!%p858_p9)
}
  0x18   :  { %s953_s11 = smov 128   ;;  %s954_s12 = smov 8  }
  0x19   :  { %59 = dma.hbm_to_vmem [thread:$0]  %s1130_s3, 2048, %s54_s30, [#allocation9], %s953_s11, %s953_s11, %s954_s12  }
  0x1a   :  { %s870_s1 = scalar_lea.vmem %s23_s9, 128  ;;  %p875_p11 = scmp.lt.s32.totalorder %s23_s9, %s23_s9 }
  0x1b   :  { %p871_p10 = scmp.ne.s32.totalorder %s23_s9, %s870_s1  ;;  %p876_p12 = scmp.lt.s32.totalorder %s870_s1, %s870_s1 }
  0x1d   :  { %p877_p13 = por %p876_p12, %p875_p11 }
  0x1f   :  { %p878_p0 = pnand %p877_p13, %p871_p10 }
  0x21   :  { %881 = shalt.err (!%p878_p0)
}
  0x22   :  { %25 = dma.hbm_to_vmem [thread:$0]  %s1127_s0, 128, %s23_s9, [#allocation3]  }
  0x23   :  { %s955_s17 = smov [#allocation7]   ;;  %s956_s19 = smov [#allocation10]  }
  0x24   :  { %s41_s18 = sshll.u32 %s955_s17, 4  ;;  %s67_s20 = sshll.u32 %s956_s19, 4  ;;  %s42_s18 = int_to_ptr.vmem [resolvable:$true] %s41_s18  ;;  %s68_s20 = int_to_ptr.vmem [resolvable:$true] %s67_s20 }
  0x25   :  { %s890_s21 = scalar_lea.vmem %s42_s18, 1792  ;;  %p895_p2 = scmp.lt.s32.totalorder %s42_s18, %s42_s18 }
  0x26   :  { %p891_p1 = scmp.ne.s32.totalorder %s42_s18, %s890_s21  ;;  %p896_p3 = scmp.lt.s32.totalorder %s890_s21, %s890_s21 }
  0x28   :  { %p897_p4 = por %p896_p3, %p895_p2 }
  0x2a   :  { %p898_p5 = pnand %p897_p4, %p891_p1 }
  0x2c   :  { %901 = shalt.err (!%p898_p5)
}
  0x2d   :  { %47 = dma.hbm_to_vmem [thread:$0]  %s1129_s2, 1792, %s42_s18, [#allocation6], %s953_s11, %s953_s11, %s954_s12  }
  0x2e   :  { %s910_s0 = scalar_lea.vmem %s68_s20, 2048  ;;  %p915_p7 = scmp.lt.s32.totalorder %s68_s20, %s68_s20 }
  0x2f   :  { %p911_p6 = scmp.ne.s32.totalorder %s68_s20, %s910_s0  ;;  %p916_p8 = scmp.lt.s32.totalorder %s910_s0, %s910_s0 }
  0x31   :  { %p917_p9 = por %p916_p8, %p915_p7 }
  0x33   :  { %p918_p10 = pnand %p917_p9, %p911_p6 }
  0x35   :  { %921 = shalt.err (!%p918_p10)
}
  0x36   :  { %73 = dma.hbm_to_vmem [thread:$0]  %s1132_s5, 2048, %s68_s20, [#allocation9], %s953_s11, %s953_s11, %s954_s12  }
  0x37   :  { %942 = dma.done.wait [#allocation3], 128  }
  0x38   :  { %943 = vsyncadd [#allocation3], 4294967168 }
  0x39   :  { %944 = dma.done.wait [#allocation6], 1920  }
  0x3a   :  { %945 = vsyncadd [#allocation6], 4294965376 }
  0x3b   :  { %946 = dma.done.wait [#allocation9], 4096  }
  0x3c   :  { %947 = vsyncadd [#allocation9], 4294963200  ;;  %v1034_v0 = vld [vmem:[#allocation2] sm:$0xff]  ;;  %s957_s2 = smov 12   ;;  %s958_s25 = smov 36   ;;  %v361_v4 = vld [vmem:[#allocation8 + $0x78] sm:$0xff] }
  0x3d   :  { %v93_v1 = vmul.f32 2.0, %v1034_v0  ;;  %v95_v2 = vmul.f32 8.0, %v1034_v0  ;;  %v94_v3 = vmul.f32 4.0, %v1034_v0  ;;  %s959_s5 = smov 24   ;;  %vm436_vm0 = vcmask 1043456   ;;  %v360_v6 = vld [vmem:[#allocation8 + $0x70] sm:$0xff] }
  0x3e   :  { %v960_v5 = vmov 0.0   ;;  %v345_v7 = vld [vmem:[#allocation7 + $0x68] sm:$0xf]  ;;  %v344_v8 = vld [vmem:[#allocation7 + $0x60] sm:$0xff]  ;;  %v359_v9 = vld [vmem:[#allocation8 + $0x68] sm:$0xff]  ;;  %vm961_vm1 = vmmov 0  }
  0x3f   :  { %97 = vrot.lane.b32.xlu0 %v93_v1, %s957_s2  ;;  %105 = vrot.lane.b32.xlu1 %v95_v2, %s958_s25  ;;  %v343_v10 = vld [vmem:[#allocation7 + $0x58] sm:$0xff]  ;;  %v358_v11 = vld [vmem:[#allocation8 + $0x60] sm:$0xff]  ;;  %v357_v13 = vld [vmem:[#allocation8 + $0x58] sm:$0xff]  ;;  %vm108_vm2 = vcmask 97280   ;;  %vm110_vm3 = vcmask 195584   ;;  %vm112_vm4 = vcmask 293888  }
  0x40   :  { %693 = vmatprep.subr.mxu0 %v960_v5  ;;  %728 = vmatprep.subr.mxu1 %v960_v5  ;;  %v342_v12 = vld [vmem:[#allocation7 + $0x50] sm:$0xff]  ;;  %v341_v14 = vld [vmem:[#allocation7 + $0x48] sm:$0xff]  ;;  %v356_v15 = vld [vmem:[#allocation8 + $0x50] sm:$0xff]  ;;  %v962_v50 = vmov 683565275   ;;  %s968_s26 = smov 60  }
  0x41   :  { %694 = vmatpush3.msra.mxu0 %v361_v4  ;;  %729 = vmatpush3.msk.msra.mxu1 %vm436_vm0, %v345_v7  ;;  %v340_v16 = vld [vmem:[#allocation7 + $0x40] sm:$0xff]  ;;  %v355_v17 = vld [vmem:[#allocation8 + $0x48] sm:$0xff]  ;;  %v354_v19 = vld [vmem:[#allocation8 + $0x40] sm:$0xff]  ;;  %v963_v52 = vmov 2475754826   ;;  %s969_s8 = smov [#allocation11]  }
  0x42   :  { %695 = vmatprep.subr.mxu0 %v960_v5  ;;  %730 = vmatprep.subr.mxu1 %v960_v5  ;;  %v339_v18 = vld [vmem:[#allocation7 + $0x38] sm:$0xff]  ;;  %v338_v20 = vld [vmem:[#allocation7 + $0x30] sm:$0xff]  ;;  %v353_v21 = vld [vmem:[#allocation8 + $0x38] sm:$0xff]  ;;  %v964_v55 = vmov 2131351028   ;;  %s621_s9 = sshll.u32 %s969_s8, 4  ;;  %s622_s9 = int_to_ptr.vmem [resolvable:$true] %s621_s9 }
  0x43   :  { %101 = vrot.lane.b32.xlu0 %v94_v3, %s959_s5  ;;  %696 = vmatpush3.msra.mxu0 %v360_v6  ;;  %v337_v22 = vld [vmem:[#allocation7 + $0x28] sm:$0xff]  ;;  %v352_v23 = vld [vmem:[#allocation8 + $0x30] sm:$0xff]  ;;  %v351_v25 = vld [vmem:[#allocation8 + $0x28] sm:$0xff]  ;;  %v965_v58 = vmov 2102212464   ;;  %s922_s10 = scalar_lea.vmem %s622_s9, 128  ;;  %p927_p12 = scmp.lt.s32.totalorder %s622_s9, %s622_s9 }
  0x44   :  { %731 = vmatpush3.msra.mxu1 %v344_v8  ;;  %697 = vmatprep.subr.mxu0 %v960_v5  ;;  %v336_v24 = vld [vmem:[#allocation7 + $0x20] sm:$0xff]  ;;  %v335_v26 = vld [vmem:[#allocation7 + $0x18] sm:$0xff]  ;;  %v350_v27 = vld [vmem:[#allocation8 + $0x20] sm:$0xff]  ;;  %v966_v61 = vmov 920167782   ;;  %p923_p11 = scmp.ne.s32.totalorder %s622_s9, %s922_s10  ;;  %p928_p13 = scmp.lt.s32.totalorder %s922_s10, %s922_s10 }
  0x45   :  { %732 = vmatprep.subr.mxu1 %v960_v5  ;;  %698 = vmatpush3.msra.mxu0 %v359_v9  ;;  %v334_v28 = vld [vmem:[#allocation7 + $0x10] sm:$0xff]  ;;  %v349_v29 = vld [vmem:[#allocation8 + $0x18] sm:$0xff]  ;;  %v348_v31 = vld [vmem:[#allocation8 + $0x10] sm:$0xff]  ;;  %v967_v1 = vmov 1326507024  }
  0x46   :  { %733 = vmatpush3.msra.mxu1 %v343_v10  ;;  %699 = vmatprep.subr.mxu0 %v960_v5  ;;  %v333_v30 = vld [vmem:[#allocation7 + $0x8] sm:$0xff]  ;;  %v347_v32 = vld [vmem:[#allocation8 + $0x8] sm:$0xff]  ;;  %v346_v33 = vld [vmem:[#allocation8] sm:$0xff]  ;;  %p929_p0 = por %p928_p13, %p927_p12 }
  0x47   :  { %734 = vmatprep.subr.mxu1 %v960_v5  ;;  %700 = vmatpush3.msra.mxu0 %v358_v11 }
  0x48   :  { %735 = vmatpush3.msra.mxu1 %v342_v12  ;;  %701 = vmatprep.subr.mxu0 %v960_v5  ;;  %p930_p1 = pnand %p929_p0, %p923_p11 }
  0x49   :  { %736 = vmatprep.subr.mxu1 %v960_v5  ;;  %702 = vmatpush3.msra.mxu0 %v357_v13 }
  0x4a   :  { %737 = vmatpush3.msra.mxu1 %v341_v14  ;;  %703 = vmatprep.subr.mxu0 %v960_v5 }
  0x4b   :  { %738 = vmatprep.subr.mxu1 %v960_v5  ;;  %704 = vmatpush3.msra.mxu0 %v356_v15 }
  0x4c   :  { %739 = vmatpush3.msra.mxu1 %v340_v16  ;;  %705 = vmatprep.subr.mxu0 %v960_v5 }
  0x4d   :  { %740 = vmatprep.subr.mxu1 %v960_v5  ;;  %706 = vmatpush3.msra.mxu0 %v355_v17 }
  0x4e   :  { %741 = vmatpush3.msra.mxu1 %v339_v18  ;;  %707 = vmatprep.subr.mxu0 %v960_v5 }
  0x4f   :  { %742 = vmatprep.subr.mxu1 %v960_v5  ;;  %708 = vmatpush3.msra.mxu0 %v354_v19 }
  0x50   :  { %743 = vmatpush3.msra.mxu1 %v338_v20  ;;  %709 = vmatprep.subr.mxu0 %v960_v5 }
  0x51   :  { %744 = vmatprep.subr.mxu1 %v960_v5  ;;  %710 = vmatpush3.msra.mxu0 %v353_v21 }
  0x52   :  { %745 = vmatpush3.msra.mxu1 %v337_v22  ;;  %711 = vmatprep.subr.mxu0 %v960_v5 }
  0x53   :  { %746 = vmatprep.subr.mxu1 %v960_v5  ;;  %712 = vmatpush3.msra.mxu0 %v352_v23 }
  0x54   :  { %747 = vmatpush3.msra.mxu1 %v336_v24  ;;  %713 = vmatprep.subr.mxu0 %v960_v5 }
  0x55   :  { %748 = vmatprep.subr.mxu1 %v960_v5  ;;  %714 = vmatpush3.msra.mxu0 %v351_v25 }
  0x56   :  { %749 = vmatpush3.msra.mxu1 %v335_v26  ;;  %715 = vmatprep.subr.mxu0 %v960_v5 }
  0x57   :  { %750 = vmatprep.subr.mxu1 %v960_v5  ;;  %716 = vmatpush3.msra.mxu0 %v350_v27 }
  0x58   :  { %751 = vmatpush3.msra.mxu1 %v334_v28  ;;  %717 = vmatprep.subr.mxu0 %v960_v5 }
  0x59   :  { %752 = vmatprep.subr.mxu1 %v960_v5  ;;  %718 = vmatpush3.msra.mxu0 %v349_v29 }
  0x5a   :  { %725 = vmatprep.mubr.msk.f32.mxu0 %vm961_vm1, %v960_v5  ;;  %719 = vmatprep.subr.mxu0 %v960_v5 }
  0x5b   :  { %753 = vmatpush3.msra.mxu1 %v333_v30  ;;  %720 = vmatpush3.msra.mxu0 %v348_v31 }
  0x5c   :  { %754 = vmatprep.subr.mxu1 %v960_v5  ;;  %721 = vmatprep.subr.mxu0 %v960_v5 }
  0x5d   :  { %756 = vmatprep.mubr.msk.f32.mxu1 %vm961_vm1, %v960_v5  ;;  %722 = vmatpush3.msra.mxu0 %v347_v32 }
  0x5e   :  { %723 = vmatprep.subr.mxu0 %v960_v5 }
  0x5f   :  { %724 = vmatpush3.msra.mxu0 %v346_v33 }
  0xb1   :  { %v98_v34 = vpop.permute.xlu0 %97  ;;  %v106_v35 = vpop.permute.xlu1 %105 }
  0xb2   :  { %v109_v36 = vsel %vm108_vm2, %v1034_v0, %v98_v34 }
  0xb5   :  { %v102_v37 = vpop.permute.xlu0 %101 }
  0xb6   :  { %v111_v38 = vsel %vm110_vm3, %v109_v36, %v102_v37 }
  0xb7   :  { %v1076_v39 = vsel %vm112_vm4, %v111_v38, %v106_v35 }
  0xb8   :  { %v117_v40 = vand.u32 2139095040, %v1076_v39  ;;  %v114_v44 = vand.u32 2147483647, %v1076_v39  ;;  %vm116_vm12 = vcmp.lt.s32.totalorder %v1076_v39, 0 }
  0xba   :  { %v118_v41 = vshrl.u32 %v117_v40, 23  ;;  %v121_v47 = vand.u32 8388607, %v114_v44  ;;  %vm115_vm13 = vcmp.le.f32.partialorder %v114_v44, 0.7853982 }
  0xbc   :  { %v632_v42 = vadd.s32 4294967169, %v118_v41  ;;  %v122_v3 = vor.u32 8388608, %v121_v47 }
  0xbe   :  { %v124_v43 = vadd.s32 1, %v632_v42  ;;  %v162_v18 = vshll.u32 %v122_v3, 8 }
  0xc0   :  { %vm125_vm5 = vcmp.gt.s32.totalorder %v124_v43, 0 }
  0xc1   :  { %v126_v45 = vsel %vm125_vm5, %v124_v43, 0 }
  0xc2   :  { %v128_v46 = vand.u32 31, %v126_v45  ;;  %v127_v49 = vshrl.u32 %v126_v45, 5 }
  0xc4   :  { %v129_v48 = vsub.s32 32, %v128_v46  ;;  %v131_v51 = vshll.u32 %v962_v50, %v128_v46  ;;  %v134_v53 = vshll.u32 %v963_v52, %v128_v46  ;;  %v137_v57 = vshll.u32 %v964_v55, %v128_v46 }
  0xc5   :  { %v140_v60 = vshll.u32 %v965_v58, %v128_v46  ;;  %v143_v63 = vshll.u32 %v966_v61, %v128_v46  ;;  %vm146_vm6 = vcmp.lt.s32.totalorder %v127_v49, 1  ;;  %vm149_vm7 = vcmp.lt.s32.totalorder %v127_v49, 4 }
  0xc6   :  { %v132_v54 = vshrl.u32 %v963_v52, %v129_v48  ;;  %v135_v56 = vshrl.u32 %v964_v55, %v129_v48  ;;  %v138_v59 = vshrl.u32 %v965_v58, %v129_v48  ;;  %v141_v62 = vshrl.u32 %v966_v61, %v129_v48 }
  0xc7   :  { %v144_v2 = vshrl.u32 %v967_v1, %v129_v48  ;;  %v130_v13 = vshrl.u32 %v962_v50, %v129_v48  ;;  %vm148_vm8 = vcmp.lt.s32.totalorder %v127_v49, 3  ;;  %vm147_vm9 = vcmp.lt.s32.totalorder %v127_v49, 2 }
  0xc8   :  { %v133_v4 = vor.u32 %v132_v54, %v131_v51  ;;  %v136_v6 = vor.u32 %v135_v56, %v134_v53  ;;  %v139_v7 = vor.u32 %v138_v59, %v137_v57  ;;  %v142_v8 = vor.u32 %v141_v62, %v140_v60  ;;  %v92_v62 = vld [vmem:[#allocation5] sm:$0xff] }
  0xc9   :  { %v145_v9 = vor.u32 %v144_v2, %v143_v63  ;;  %v332_v63 = vld [vmem:[#allocation7] sm:$0xff]  ;;  %726 = vmatmul.mubr.f32.vlgmr.msra.gmra.mxu0 %v92_v62 }
  0xca   :  { %v151_v10 = vsel %vm149_vm7, %v139_v7, 2102212464  ;;  %v154_v11 = vsel %vm146_vm6, %v133_v4, %v136_v6  ;;  %v158_v12 = vsel %vm146_vm6, %v136_v6, %v139_v7  ;;  %v155_v14 = vsel %vm149_vm7, %v142_v8, 920167782  ;;  %755 = vmatpush3.msra.mxu1 %v332_v63 }
  0xcb   :  { %v159_v15 = vsel %vm149_vm7, %v145_v9, 1326507024  ;;  %v156_v16 = vsel %vm148_vm8, %v139_v7, %v155_v14  ;;  %v150_v19 = vsel %vm146_vm6, %v130_v13, %v133_v4  ;;  %v152_v20 = vsel %vm148_vm8, %v136_v6, %v151_v10  ;;  %759 = vmatprep.subr.mxu1 %v960_v5 }
  0xcc   :  { %v160_v17 = vsel %vm148_vm8, %v142_v8, %v159_v15  ;;  %v157_v21 = vsel %vm147_vm9, %v154_v11, %v156_v16  ;;  %v153_v27 = vsel %vm147_vm9, %v150_v19, %v152_v20  ;;  %vm206_vm6 = vweird.f32 %v1076_v39  ;;  %v535_v20 = vld [vmem:[#allocation10 + $0x70] sm:$0xff] }
  0xcd   :  { %v161_v22 = vsel %vm147_vm9, %v158_v12, %v160_v17  ;;  %v1085_v25 = vmul.u32.u64.low %v162_v18, %v157_v21  ;;  %v1086_v26 = vmul.u32.u64.high %v162_v18, %v157_v21, %v1085_v25  ;;  %v169_v29 = vmul.u32 %v162_v18, %v153_v27  ;;  %v533_v21 = vld [vmem:[#allocation10 + $0x60] sm:$0xff]  ;;  %v526_v27 = vld [vmem:[#allocation10 + $0x28] sm:$0xff] }
  0xce   :  { %v1082_v23 = vmul.u32.u64.low %v162_v18, %v161_v22  ;;  %v1083_v24 = vmul.u32.u64.high %v162_v18, %v161_v22, %v1082_v23  ;;  %vm330_vm7 = vcmask 490496   ;;  %vm432_vm8 = vcmask 883712   ;;  %v536_v18 = vld [vmem:[#allocation10 + $0x78] sm:$0xff] }
  0xcf   :  { %v172_v28 = vadd.s32 1, %v1086_v26  ;;  %v532_v22 = vld [vmem:[#allocation10 + $0x58] sm:$0xff]  ;;  %v530_v23 = vld [vmem:[#allocation10 + $0x48] sm:$0xff] }
  0xd0   :  { %vm171_vm10 = vc.u32 %v1083_v24, %v1085_v25  ;;  %v170_v42 = vadd.s32 %v1085_v25, %v1083_v24  ;;  %v529_v24 = vld [vmem:[#allocation10 + $0x40] sm:$0xff]  ;;  %v528_v25 = vld [vmem:[#allocation10 + $0x38] sm:$0xff] }
  0xd1   :  { %v173_v30 = vsel %vm171_vm10, %v172_v28, %v1086_v26  ;;  %v527_v26 = vld [vmem:[#allocation10 + $0x30] sm:$0xff]  ;;  %v525_v28 = vld [vmem:[#allocation10 + $0x20] sm:$0xff] }
  0xd2   :  { %v174_v31 = vadd.s32 %v173_v30, %v169_v29 }
  0xd4   :  { %v175_v32 = vadd.s32 536870912, %v174_v31 }
  0xd6   :  { %v176_v33 = vshrl.u32 %v175_v32, 30  ;;  %v523_v32 = vld [vmem:[#allocation10 + $0x10] sm:$0xff] }
  0xd8   :  { %v177_v34 = vshll.u32 %v176_v33, 30  ;;  %v200_v56 = vsub.s32 4, %v176_v33 }
  0xda   :  { %v178_v35 = vsub.s32 %v174_v31, %v177_v34  ;;  %v201_v59 = vsel %vm116_vm12, %v200_v56, %v176_v33  ;;  %v524_v31 = vld [vmem:[#allocation10 + $0x18] sm:$0xff]  ;;  %v522_v33 = vld [vmem:[#allocation10 + $0x8] sm:$0xff]  ;;  %v521_v34 = vld [vmem:[#allocation10] sm:$0xff] }
  0xdb   :  { %v203_v60 = vsel %vm115_vm13, 0, %v201_v59 }
  0xdc   :  { %v180_v36 = vsub.s32 0, %v178_v35  ;;  %v207_v61 = vadd.s32 3, %v203_v60  ;;  %v311_v1 = vand.u32 3, %v203_v60 }
  0xde   :  { %v633_v37 = vmin.u32 %v180_v36, %v178_v35  ;;  %v208_v2 = vand.u32 3, %v207_v61  ;;  %vm316_vm14 = vcmp.eq.s32.totalorder %v311_v1, 2  ;;  %vm313_vm0 = vcmp.eq.s32.totalorder %v311_v1, 0  ;;  %v642_v36 = vld [vmem:[%s1131_s4] ss:$0 sm:$0xff] }
  0xdf   :  { %vm312_vm4 = vcmp.lt.s32.totalorder %v311_v1, 2 }
  0xe0   :  { %v182_v38 = vclz %v633_v37  ;;  %vm213_vm15 = vcmp.eq.s32.totalorder %v208_v2, 2  ;;  %vm210_vm3 = vcmp.eq.s32.totalorder %v208_v2, 0  ;;  %vm209_vm5 = vcmp.lt.s32.totalorder %v208_v2, 2 }
  0xe2   :  { %v634_v40 = vadd.s32 4294967294, %v182_v38 }
  0xe4   :  { %vm635_vm11 = vcmp.lt.s32.totalorder %v634_v40, 0 }
  0xe5   :  { %v185_v41 = vsel %vm635_vm11, 0, %v634_v40 }
  0xe6   :  { %v186_v43 = vsub.s32 32, %v185_v41  ;;  %v190_v45 = vsub.s32 4294967266, %v185_v41  ;;  %v187_v46 = vshll.u32 %v178_v35, %v185_v41 }
  0xe8   :  { %v188_v47 = vshrl.u32 %v170_v42, %v186_v43  ;;  %v191_v48 = vadd.s32 127, %v190_v45  ;;  %v643_v43 = vld [vmem:[%s1133_s6] ss:$0 sm:$0xff] }
  0xea   :  { %v189_v49 = vor.u32 %v188_v47, %v187_v46  ;;  %v192_v50 = vshll.u32 %v191_v48, 23 }
  0xec   :  { %v193_v51 = vor.u32 4788187, %v192_v50  ;;  %v196_v53 = vcvt.s32.f32 %v189_v49 }
  0xee   :  { %v194_v52 = vand.u32 2147483647, %v193_v51 }
  0xf0   :  { %v197_v54 = vmul.f32 %v196_v53, %v194_v52 }
  0xf2   :  { %v198_v55 = vxor.u32 2147483648, %v197_v54 }
  0xf4   :  { %v199_v57 = vsel %vm116_vm12, %v198_v55, %v197_v54 }
  0xf5   :  { %v202_v58 = vsel %vm115_vm13, %v1076_v39, %v199_v57  ;;  %v534_v39 = vld [vmem:[#allocation10 + $0x68] sm:$0xff] }
  0xf6   :  { %818 = vcosq.f32 %v202_v58 }
  0xf7   :  { %820 = vsinq.f32 %v202_v58 }
 0x103   :  { %v819_v3 = vpop.eup %818 }
 0x104   :  { %v821_v4 = vpop.eup %820  ;;  %v214_v6 = vxor.u32 2147483648, %v819_v3 }
 0x105   :  { %v211_v44 = vxor.u32 2147483648, %v821_v4 }
 0x106   :  { %v318_v7 = vsel %vm316_vm14, %v214_v6, %v821_v4  ;;  %v215_v8 = vsel %vm213_vm15, %v214_v6, %v821_v4 }
 0x107   :  { %v315_v9 = vsel %vm313_vm0, %v819_v3, %v211_v44  ;;  %v212_v10 = vsel %vm210_vm3, %v819_v3, %v211_v44 }
 0x108   :  { %v319_v11 = vsel %vm312_vm4, %v315_v9, %v318_v7  ;;  %v216_v12 = vsel %vm209_vm5, %v212_v10, %v215_v8 }
 0x109   :  { %v320_v13 = vsel %vm206_vm6, nan, %v319_v11  ;;  %v217_v14 = vsel %vm206_vm6, nan, %v216_v12 }
 0x10a   :  { %326 = vrot.lane.b32.xlu0 %v320_v13, %s968_s26  ;;  %322 = vrot.lane.b32.xlu1 %v217_v14, %s957_s2 }
 0x17c   :  { %v327_v15 = vpop.permute.xlu0 %326  ;;  %v323_v16 = vpop.permute.xlu1 %322 }
 0x17d   :  { %v329_v17 = vsel %vm108_vm2, %v1034_v0, %v323_v16  ;;  %v531_v0 = vld [vmem:[#allocation10 + $0x50] sm:$0xff] }
 0x17e   :  { %v331_v19 = vsel %vm330_vm7, %v329_v17, %v327_v15 }
 0x17f   :  { %757 = vmatmul.mubr.msk.f32.vlgmr.msra.gmra.mxu1 %vm432_vm8, %v331_v19 }
 0x180   :  { %760 = vmatpush3.msra.mxu1 %v536_v18  ;;  %791 = vmatprep.mubr.msk.f32.mxu1 %vm961_vm1, %v960_v5 }
 0x181   :  { %761 = vmatprep.subr.mxu1 %v960_v5 }
 0x182   :  { %762 = vmatpush3.msra.mxu1 %v535_v20 }
 0x183   :  { %763 = vmatprep.subr.mxu1 %v960_v5 }
 0x184   :  { %764 = vmatpush3.msra.mxu1 %v534_v39 }
 0x185   :  { %765 = vmatprep.subr.mxu1 %v960_v5 }
 0x186   :  { %766 = vmatpush3.msra.mxu1 %v533_v21 }
 0x187   :  { %767 = vmatprep.subr.mxu1 %v960_v5 }
 0x188   :  { %768 = vmatpush3.msra.mxu1 %v532_v22 }
 0x189   :  { %769 = vmatprep.subr.mxu1 %v960_v5  ;;  %v428_v29 = vpop.f32.mrf.mxu0 }
 0x18a   :  { %770 = vmatpush3.msra.mxu1 %v531_v0 }
 0x18b   :  { %771 = vmatprep.subr.mxu1 %v960_v5  ;;  %v727_v30 = vpop.f32.mrf.mxu0 }
 0x18c   :  { %772 = vmatpush3.msra.mxu1 %v530_v23 }
 0x18d   :  { %773 = vmatprep.subr.mxu1 %v960_v5 }
 0x18e   :  { %774 = vmatpush3.msra.mxu1 %v529_v24 }
 0x18f   :  { %775 = vmatprep.subr.mxu1 %v960_v5 }
 0x190   :  { %776 = vmatpush3.msra.mxu1 %v528_v25 }
 0x191   :  { %777 = vmatprep.subr.mxu1 %v960_v5 }
 0x192   :  { %778 = vmatpush3.msra.mxu1 %v527_v26 }
 0x193   :  { %779 = vmatprep.subr.mxu1 %v960_v5 }
 0x194   :  { %780 = vmatpush3.msra.mxu1 %v526_v27 }
 0x195   :  { %781 = vmatprep.subr.mxu1 %v960_v5 }
 0x196   :  { %782 = vmatpush3.msra.mxu1 %v525_v28 }
 0x197   :  { %783 = vmatprep.subr.mxu1 %v960_v5 }
 0x198   :  { %784 = vmatpush3.msra.mxu1 %v524_v31 }
 0x199   :  { %785 = vmatprep.subr.mxu1 %v960_v5 }
 0x19a   :  { %786 = vmatpush3.msra.mxu1 %v523_v32 }
 0x19b   :  { %787 = vmatprep.subr.mxu1 %v960_v5 }
 0x19c   :  { %788 = vmatpush3.msra.mxu1 %v522_v33 }
 0x19d   :  { %789 = vmatprep.subr.mxu1 %v960_v5 }
 0x19e   :  { %790 = vmatpush3.msra.mxu1 %v521_v34 }
 0x23f   :  { %v506_v35 = vpop.f32.mrf.mxu1 }
 0x240   :  { %v507_v37 = vadd.f32 %v506_v35, %v428_v29 }
 0x241   :  { %v758_v38 = vpop.f32.mrf.mxu1 }
 0x242   :  { %v517_v40 = vadd.f32 %v642_v36, %v507_v37 }
 0x244   :  { %v519_v41 = vmul.f32 0.01, %v517_v40  ;;  %vm518_vm1 = vcmp.gt.f32.partialorder %v517_v40, 0.0 }
 0x246   :  { %v520_v42 = vsel %vm518_vm1, %v517_v40, %v519_v41 }
 0x247   :  { %792 = vmatmul.mubr.f32.vlgmr.msra.gmra.mxu1 %v520_v42 }
 0x307   :  { %v610_v5 = vpop.f32.mrf.mxu1 }
 0x308   :  { %v611_v45 = vadd.f32 %v643_v43, %v610_v5 }
 0x309   :  { %v793_v46 = vpop.f32.mrf.mxu1 }
 0x30a   :  { %614 = vst [vmem:[#allocation11] sm:$0xff] %v611_v45 }
 0x30b   :  { %933 = shalt.err (!%p930_p1)
}
 0x30c   :  { %624 = dma.vmem_to_hbm [thread:$0]  %s622_s9, 128, %s1134_s7, [#allocation4]  }
 0x30d   :  { %948 = dma.done.wait [#allocation4], 128  }
 0x30e   :  { %949 = vsyncadd [#allocation4], 4294967168 }
 0x30f   :  { %628 = vsyncpa [#allocation3], 1 }
 0x310   :  { %629 = vsyncpa [#allocation6], 1 }
 0x311   :  { %630 = vsyncpa [#allocation9], 1 }
 0x312   :  { %631 = vsyncpa [#allocation4], 1 }

</bundles_post_ra>
